<compile_context>
chip_gen: v5e
topology: v5e:2x2
jax: 0.10.0
libtpu: 0.0.40
codegen_flags: <defaults>
</compile_context>

<pallas_src>
import jax
import jax.numpy as jnp
from jax.experimental import pallas as pl
from jax.experimental.pallas import tpu as pltpu

N_CELLS = 9        # TicTacToe board size (env.n)
HIDDEN = 128
BATCH = 2

LANE = 128         # lane width: pad all last dims to this
SUBLANE = 8        # f32 sublane group (min batch-tile granularity)
MAX_TILE_B = 512   # batch tile (amortizes per-grid-step pipeline overhead)


def dqn_mlp_kernel(x_ref, w_ref, b_ref, o_ref, xpad_ref):
    """Fused 3-layer MLP on one (tile_b, *) batch tile.

    x_ref:    (tile_b, 9)      raw observations (no wrapper padding)
    w_ref:    (3, 128, 128)    packed bf16 [w1_pad, w2, w3_pad]  (in, out) layout
    b_ref:    (3, 1,   128)    packed f32  [b1,     b2, b3_pad]
    o_ref:    (tile_b, 128)    lane-dense f32 Q-values (cols >= 9 are padding)
    xpad_ref: (tile_b, 128)    VMEM scratch for the 9 -> 128 lane pad
    """
    # Zero the whole scratch every step (trivial VPU cost) so padding lanes are
    # guaranteed zero even when the batch grid is sharded across TensorCores,
    # then drop the real 9 feature columns in.
    xpad_ref[...] = jnp.zeros_like(xpad_ref)
    xpad_ref[:, :N_CELLS] = x_ref[...]

    x = xpad_ref[...].astype(jnp.bfloat16)           # bf16 only at MXU operands
    h = jnp.dot(x, w_ref[0], preferred_element_type=jnp.float32) + b_ref[0]
    h = jnp.maximum(h, 0.0)                           # f32 bias + ReLU
    h = jnp.dot(h.astype(jnp.bfloat16), w_ref[1],
                preferred_element_type=jnp.float32) + b_ref[1]
    h = jnp.maximum(h, 0.0)
    o_ref[...] = (
        jnp.dot(h.astype(jnp.bfloat16), w_ref[2],
                preferred_element_type=jnp.float32) + b_ref[2]
    ).astype(o_ref.dtype)


def init_params(key, n_in, hidden, n_out):
    """Deterministic init mimicking torch.nn.Linear (U[-1/sqrt(fan_in), ...])."""
    keys = jax.random.split(key, 6)

    def linear(kw, kb, fan_in, fan_out):
        bound = 1.0 / jnp.sqrt(jnp.float32(fan_in))
        # stored as (in, out) so the kernel does x @ W
        w = jax.random.uniform(kw, (fan_in, fan_out), jnp.float32, -bound, bound)
        b = jax.random.uniform(kb, (1, fan_out), jnp.float32, -bound, bound)
        return w, b

    w1, b1 = linear(keys[0], keys[1], n_in, hidden)
    w2, b2 = linear(keys[2], keys[3], hidden, hidden)
    w3, b3 = linear(keys[4], keys[5], hidden, n_out)
    return (w1, b1, w2, b2, w3, b3)


def pack_params(params):
    """One-time zero-pad + pack into two contiguous lane-dense buffers.

    Weights are stored bf16 (halves the resident-weight DMA; MXU-native on all
    three chip generations); biases stay f32 (added on the VPU).
    """
    w1, b1, w2, b2, w3, b3 = params
    n_in = w1.shape[0]
    n_out = w3.shape[1]
    w1p = jnp.zeros((LANE, HIDDEN), jnp.float32).at[:n_in, :].set(w1)
    w3p = jnp.zeros((HIDDEN, LANE), jnp.float32).at[:, :n_out].set(w3)
    b3p = jnp.zeros((1, LANE), jnp.float32).at[:, :n_out].set(b3)
    w_packed = jnp.stack([w1p, w2, w3p]).astype(jnp.bfloat16)  # (3, 128, 128) bf16
    b_packed = jnp.stack([b1, b2, b3p])                        # (3, 1,   128) f32
    return w_packed, b_packed


def dqn_forward(x, packed, n_out=N_CELLS):
    """x: (B, env.n) float32. Returns (B, n_out) Q-values."""
    w_packed, b_packed = packed
    B, n_in = x.shape
    assert n_in == N_CELLS

    # Sublane-aligned batch tile, capped at MAX_TILE_B.  Ragged last block is
    # handled by Pallas (masked output write); no wrapper padding.
    tile_b = min(((B + SUBLANE - 1) // SUBLANE) * SUBLANE, MAX_TILE_B)
    grid_b = pl.cdiv(B, tile_b)

    flops = 2 * grid_b * tile_b * (LANE * HIDDEN + HIDDEN * HIDDEN + HIDDEN * LANE)
    bytes_accessed = (
        B * N_CELLS * 4          # x (f32, unpadded)
        + 3 * HIDDEN * LANE * 2  # bf16 weights, fetched once (grid-resident)
        + 3 * 1 * LANE * 4       # f32 biases
        + B * LANE * 4           # lane-dense f32 output slab
    )

    out = pl.pallas_call(
        dqn_mlp_kernel,
        out_shape=jax.ShapeDtypeStruct((B, LANE), jnp.float32),
        grid_spec=pltpu.PrefetchScalarGridSpec(
            num_scalar_prefetch=0,
            grid=(grid_b,),
            in_specs=[
                # last dim (9) equals the full array dim -> (8,128) rule OK
                pl.BlockSpec((tile_b, N_CELLS), lambda i: (i, 0)),
                # weights/biases: same block every step -> VMEM-resident
                pl.BlockSpec((3, HIDDEN, LANE), lambda i: (0, 0, 0)),
                pl.BlockSpec((3, 1, LANE), lambda i: (0, 0, 0)),
            ],
            out_specs=pl.BlockSpec((tile_b, LANE), lambda i: (i, 0)),
            scratch_shapes=[pltpu.VMEM((tile_b, LANE), jnp.float32)],
        ),
        compiler_params=pltpu.CompilerParams(
            dimension_semantics=("parallel",),
        ),
        cost_estimate=pl.CostEstimate(
            flops=flops, transcendentals=0, bytes_accessed=bytes_accessed,
        ),
    )(x, w_packed, b_packed)

    # Slice the real action columns out of the lane-dense slab.
    return out[:, :n_out]


def reference_forward(x, params):
    """Pure-JAX reference with the same numerics (bf16 operands, f32 accum)."""
    w1, b1, w2, b2, w3, b3 = params

    def mm(a, w):
        return jnp.dot(a.astype(jnp.bfloat16), w.astype(jnp.bfloat16),
                       preferred_element_type=jnp.float32)

    h1 = jnp.maximum(mm(x, w1) + b1, 0.0)
    h2 = jnp.maximum(mm(h1, w2) + b2, 0.0)
    return mm(h2, w3) + b3


# TODO(synk): DQN.act()'s epsilon-greedy branching / env interaction is host-side
# Python control flow, not part of the forward pass, so it is not a kernel op.

if __name__ == "__main__":
    key = jax.random.PRNGKey(0)
    k_params, k_x1, k_x2 = jax.random.split(key, 3)

    params = init_params(k_params, N_CELLS, HIDDEN, N_CELLS)
    packed = pack_params(params)

    # act()-style tiny batch: board observations as float32, shape (B, env.n)
    x_small = jax.random.normal(k_x1, (BATCH, N_CELLS), dtype=jnp.float32)
    out_small = jax.block_until_ready(dqn_forward(x_small, packed))
    ref_small = reference_forward(x_small, params)
    assert out_small.shape == (BATCH, N_CELLS)
    assert jnp.allclose(out_small, ref_small, atol=2e-2, rtol=2e-2)

    # training-style batch: exercises multi-step grid + ragged last block
    B_BIG = 600
    x_big = jax.random.normal(k_x2, (B_BIG, N_CELLS), dtype=jnp.float32)
    out_big = jax.block_until_ready(dqn_forward(x_big, packed))
    ref_big = reference_forward(x_big, params)
    assert out_big.shape == (B_BIG, N_CELLS)
    assert jnp.allclose(out_big, ref_big, atol=2e-2, rtol=2e-2)

    print("KERNEL_OK")
</pallas_src>

<mosaic_0001>
module attributes {stable_mosaic.version = 11 : i64} {
  func.func @dqn_mlp_kernel(%arg0: i32, %arg1: memref<8x9xf32, #tpu.memory_space<vmem>>, %arg2: memref<3x128x128xbf16, #tpu.memory_space<vmem>>, %arg3: memref<3x1x128xf32, #tpu.memory_space<vmem>>, %arg4: memref<8x128xf32, #tpu.memory_space<vmem>>, %arg5: memref<8x128xf32, #tpu.memory_space<vmem>>) attributes {dimension_semantics = [#tpu.dimension_semantics<parallel>], iteration_bounds = array<i64: 1>, scalar_prefetch = 0 : i64, scratch_operands = 1 : i64, tpu.core_type = #tpu.core_type<tc>, window_params = [{transform_indices = @transform_0, window_bounds = array<i64: 8, 9>}, {pipeline_mode = #tpu.pipeline_mode<synchronous>, transform_indices = @transform_1, window_bounds = array<i64: 3, 128, 128>}, {pipeline_mode = #tpu.pipeline_mode<synchronous>, transform_indices = @transform_2, window_bounds = array<i64: 3, 1, 128>}, {transform_indices = @transform_3, window_bounds = array<i64: 8, 128>}]} {
    %cst = arith.constant 0.000000e+00 : f32
    %0 = vector.broadcast %cst : f32 to vector<8x128xf32>
    %c0 = arith.constant 0 : index
    %c0_0 = arith.constant 0 : index
    %1 = vector.load %arg5[%c0, %c0_0] : memref<8x128xf32, #tpu.memory_space<vmem>>, vector<8x128xf32>
    tpu.vector_store %arg5[%c0, %c0_0], %0 {strides = array<i32>} : memref<8x128xf32, #tpu.memory_space<vmem>>, vector<8x128xf32>,
    %c0_1 = arith.constant 0 : index
    %c0_2 = arith.constant 0 : index
    %2 = vector.load %arg1[%c0_1, %c0_2] : memref<8x9xf32, #tpu.memory_space<vmem>>, vector<8x9xf32>
    %c0_3 = arith.constant 0 : index
    %c0_4 = arith.constant 0 : index
    %3 = vector.load %arg5[%c0_3, %c0_4] : memref<8x128xf32, #tpu.memory_space<vmem>>, vector<8x9xf32>
    tpu.vector_store %arg5[%c0_3, %c0_4], %2 {strides = array<i32>} : memref<8x128xf32, #tpu.memory_space<vmem>>, vector<8x9xf32>,
    %c0_5 = arith.constant 0 : index
    %c0_6 = arith.constant 0 : index
    %4 = vector.load %arg5[%c0_5, %c0_6] : memref<8x128xf32, #tpu.memory_space<vmem>>, vector<8x128xf32>
    %5 = arith.truncf %4 : vector<8x128xf32> to vector<8x128xbf16>
    %c0_7 = arith.constant 0 : index
    %c0_8 = arith.constant 0 : index
    %c0_9 = arith.constant 0 : index
    %6 = vector.load %arg2[%c0_7, %c0_8, %c0_9] : memref<3x128x128xbf16, #tpu.memory_space<vmem>>, vector<1x128x128xbf16>
    %7 = vector.shape_cast %6 : vector<1x128x128xbf16> to vector<128x128xbf16>
    %cst_10 = arith.constant dense<0.000000e+00> : vector<8x128xf32>
    %8 = tpu.matmul %5, %7, %cst_10 {dimension_numbers = #tpu.dot_dimension_numbers<[1], [0], [0], [1], [0, 0, 1, 1], [], []>} : vector<8x128xbf16>, vector<128x128xbf16>, vector<8x128xf32> -> vector<8x128xf32>
    %c0_11 = arith.constant 0 : index
    %c0_12 = arith.constant 0 : index
    %c0_13 = arith.constant 0 : index
    %9 = vector.load %arg3[%c0_11, %c0_12, %c0_13] : memref<3x1x128xf32, #tpu.memory_space<vmem>>, vector<1x1x128xf32>
    %10 = vector.shape_cast %9 : vector<1x1x128xf32> to vector<1x128xf32>
    %11 = vector.broadcast %10 : vector<1x128xf32> to vector<8x128xf32>
    %12 = arith.addf %8, %11 : vector<8x128xf32>
    %cst_14 = arith.constant 0.000000e+00 : f32
    %13 = vector.broadcast %cst_14 : f32 to vector<8x128xf32>
    %14 = arith.maximumf %12, %13 : vector<8x128xf32>
    %15 = arith.truncf %14 : vector<8x128xf32> to vector<8x128xbf16>
    %c1 = arith.constant 1 : index
    %c0_15 = arith.constant 0 : index
    %c0_16 = arith.constant 0 : index
    %16 = vector.load %arg2[%c1, %c0_15, %c0_16] : memref<3x128x128xbf16, #tpu.memory_space<vmem>>, vector<1x128x128xbf16>
    %17 = vector.shape_cast %16 : vector<1x128x128xbf16> to vector<128x128xbf16>
    %cst_17 = arith.constant dense<0.000000e+00> : vector<8x128xf32>
    %18 = tpu.matmul %15, %17, %cst_17 {dimension_numbers = #tpu.dot_dimension_numbers<[1], [0], [0], [1], [0, 0, 1, 1], [], []>} : vector<8x128xbf16>, vector<128x128xbf16>, vector<8x128xf32> -> vector<8x128xf32>
    %c1_18 = arith.constant 1 : index
    %c0_19 = arith.constant 0 : index
    %c0_20 = arith.constant 0 : index
    %19 = vector.load %arg3[%c1_18, %c0_19, %c0_20] : memref<3x1x128xf32, #tpu.memory_space<vmem>>, vector<1x1x128xf32>
    %20 = vector.shape_cast %19 : vector<1x1x128xf32> to vector<1x128xf32>
    %21 = vector.broadcast %20 : vector<1x128xf32> to vector<8x128xf32>
    %22 = arith.addf %18, %21 : vector<8x128xf32>
    %cst_21 = arith.constant 0.000000e+00 : f32
    %23 = vector.broadcast %cst_21 : f32 to vector<8x128xf32>
    %24 = arith.maximumf %22, %23 : vector<8x128xf32>
    %25 = arith.truncf %24 : vector<8x128xf32> to vector<8x128xbf16>
    %c2 = arith.constant 2 : index
    %c0_22 = arith.constant 0 : index
    %c0_23 = arith.constant 0 : index
    %26 = vector.load %arg2[%c2, %c0_22, %c0_23] : memref<3x128x128xbf16, #tpu.memory_space<vmem>>, vector<1x128x128xbf16>
    %27 = vector.shape_cast %26 : vector<1x128x128xbf16> to vector<128x128xbf16>
    %cst_24 = arith.constant dense<0.000000e+00> : vector<8x128xf32>
    %28 = tpu.matmul %25, %27, %cst_24 {dimension_numbers = #tpu.dot_dimension_numbers<[1], [0], [0], [1], [0, 0, 1, 1], [], []>} : vector<8x128xbf16>, vector<128x128xbf16>, vector<8x128xf32> -> vector<8x128xf32>
    %c2_25 = arith.constant 2 : index
    %c0_26 = arith.constant 0 : index
    %c0_27 = arith.constant 0 : index
    %29 = vector.load %arg3[%c2_25, %c0_26, %c0_27] : memref<3x1x128xf32, #tpu.memory_space<vmem>>, vector<1x1x128xf32>
    %30 = vector.shape_cast %29 : vector<1x1x128xf32> to vector<1x128xf32>
    %31 = vector.broadcast %30 : vector<1x128xf32> to vector<8x128xf32>
    %32 = arith.addf %28, %31 : vector<8x128xf32>
    %c0_28 = arith.constant 0 : index
    %c0_29 = arith.constant 0 : index
    %33 = vector.load %arg4[%c0_28, %c0_29] : memref<8x128xf32, #tpu.memory_space<vmem>>, vector<8x128xf32>
    tpu.vector_store %arg4[%c0_28, %c0_29], %32 {strides = array<i32>} : memref<8x128xf32, #tpu.memory_space<vmem>>, vector<8x128xf32>,
    return
  }
  func.func @transform_0(%arg0: i32) -> (i32, i32) {
    %c0_i32 = arith.constant 0 : i32
    %c0_i32_0 = arith.constant 0 : i32
    return %arg0, %c0_i32 : i32, i32
  }
  func.func @transform_1(%arg0: i32) -> (i32, i32, i32) {
    %c0_i32 = arith.constant 0 : i32
    %c0_i32_0 = arith.constant 0 : i32
    %c0_i32_1 = arith.constant 0 : i32
    %c0_i32_2 = arith.constant 0 : i32
    return %c0_i32, %c0_i32_0, %c0_i32_1 : i32, i32, i32
  }
  func.func @transform_2(%arg0: i32) -> (i32, i32, i32) {
    %c0_i32 = arith.constant 0 : i32
    %c0_i32_0 = arith.constant 0 : i32
    %c0_i32_1 = arith.constant 0 : i32
    %c0_i32_2 = arith.constant 0 : i32
    return %c0_i32, %c0_i32_0, %c0_i32_1 : i32, i32, i32
  }
  func.func @transform_3(%arg0: i32) -> (i32, i32) {
    %c0_i32 = arith.constant 0 : i32
    %c0_i32_0 = arith.constant 0 : i32
    return %arg0, %c0_i32 : i32, i32
  }
}

</mosaic_0001>

<bundles_post_ra>
// kernel: tpu_custom_call.1
= control target key start
LH: loop header
LB: loop body
LE: loop exit
PB: predicated region body
PF: predicated region fallthrough
CT: control target
= control target key end

     0   :  { %8 = vsyncpa [#allocation4], 0  ;;  %s625_s0 = inlined_call_operand.hbm [shape: f32[2,9], index: 0, kind: input, shape index: {}]   ;;  %s626_s1 = inlined_call_operand.hbm [shape: bf16[3,128,128], index: 1, kind: input, shape index: {}]   ;;  %s627_s2 = inlined_call_operand.hbm [shape: f32[3,1,128], index: 2, kind: input, shape index: {}]   ;;  %s628_s3 = inlined_call_operand.hbm [shape: f32[2,128], index: 3, kind: output, shape index: {}]  }
   0x1   :  { %9 = vsyncpa [#allocation7], 0 }
   0x2   :  { %10 = vsyncpa [#allocation5], 0  ;;  %s28_s14 = sshll.u32 %s626_s1, 4  ;;  %s29_s14 = int_to_ptr.hbm [resolvable:$true] %s28_s14 }
   0x3   :  { %14 = vsyncadd [#allocation4], 96  ;;  %s576_s15 = smov [#allocation6]   ;;  %s15_s19 = sshll.u32 %s625_s0, 4  ;;  %s16_s19 = int_to_ptr.hbm [resolvable:$true] %s15_s19 }
   0x4   :  { %s30_s16 = sshll.u32 %s576_s15, 4  ;;  %s577_s20 = smov 64   ;;  %s31_s16 = int_to_ptr.vmem [resolvable:$true] %s30_s16 }
   0x5   :  { %s578_s21 = smov 4   ;;  %s579_s22 = smov [#allocation3]  }
   0x6   :  { %36 = dma.hbm_to_vmem [thread:$0]  %s29_s14, 3072, %s31_s16, [#allocation7], %s577_s20, %s577_s20, %s578_s21  }
   0x7   :  { %s17_s23 = sshll.u32 %s579_s22, 4  ;;  %s580_s24 = smov 32   ;;  %s18_s23 = int_to_ptr.vmem [resolvable:$true] %s17_s23 }
   0x8   :  { %s581_s25 = smov 2   ;;  %s41_s27 = sshll.u32 %s627_s2, 4  ;;  %s42_s27 = int_to_ptr.hbm [resolvable:$true] %s41_s27 }
   0x9   :  { %23 = dma.hbm_to_vmem [thread:$0]  %s16_s19, 32, %s18_s23, [#allocation4], %s580_s24, %s580_s24, %s581_s25  }
   0xa   :  { %s582_s28 = smov [#allocation8]   ;;  %s583_s29 = smov 16  }
   0xb   :  { %s43_s0 = sshll.u32 %s582_s28, 4  ;;  %s584_s30 = smov 1   ;;  %s44_s0 = int_to_ptr.vmem [resolvable:$true] %s43_s0 }
   0xc   :  { %49 = dma.hbm_to_vmem [thread:$0]  %s42_s27, 48, %s44_s0, [#allocation7], %s583_s29, %s583_s29, %s584_s30  }
   0xd   :  { %570 = dma.done.wait [#allocation4], 128  }
   0xe   :  { %571 = vsyncadd [#allocation4], 4294967168 }
   0xf   :  { %572 = dma.done.wait [#allocation7], 3120  }
  0x10   :  { %573 = vsyncadd [#allocation7], 4294964176  ;;  %v585_v0 = vmov 0.0   ;;  %v443_v1 = vld [vmem:[#allocation6 + $0x38] sm:$0xff]  ;;  %vm64_vm0 = vcmask 72704   ;;  %v442_v2 = vld [vmem:[#allocation6 + $0x30] sm:$0xff] }
  0x11   :  { %62 = vst [vmem:[#allocation2] sm:$0xff] %v585_v0  ;;  %136 = vmatpush.bf16.msra.mxu0 %v443_v1  ;;  %v63_v3 = vld [vmem:[#allocation3] sm:$0xff]  ;;  %v450_v5 = vld [vmem:[#allocation6 + $0x70] sm:$0xff]  ;;  %v441_v6 = vld [vmem:[#allocation6 + $0x28] sm:$0xff] }
  0x12   :  { %65 = vst.msk [vmem:[#allocation2] sm:$0xff] %vm64_vm0, %v63_v3  ;;  %v451_v4 = vld [vmem:[#allocation6 + $0x78] sm:$0xff]  ;;  %v449_v7 = vld [vmem:[#allocation6 + $0x68] sm:$0xff]  ;;  %v440_v8 = vld [vmem:[#allocation6 + $0x20] sm:$0xff] }
  0x13   :  { %221 = vmatpush.bf16.msra.mxu1 %v451_v4  ;;  %v448_v9 = vld [vmem:[#allocation6 + $0x60] sm:$0xff]  ;;  %v439_v10 = vld [vmem:[#allocation6 + $0x18] sm:$0xff]  ;;  %v438_v12 = vld [vmem:[#allocation6 + $0x10] sm:$0xff] }
  0x14   :  { %v447_v11 = vld [vmem:[#allocation6 + $0x58] sm:$0xff]  ;;  %v446_v13 = vld [vmem:[#allocation6 + $0x50] sm:$0xff]  ;;  %v437_v14 = vld [vmem:[#allocation6 + $0x8] sm:$0xff] }
  0x15   :  { %137 = vmatpush.bf16.msra.mxu0 %v442_v2  ;;  %v436_v15 = vld [vmem:[#allocation6] sm:$0xff]  ;;  %v445_v18 = vld [vmem:[#allocation6 + $0x48] sm:$0xff]  ;;  %v459_v20 = vld [vmem:[#allocation6 + $0xb8] sm:$0xff] }
  0x16   :  { %v444_v19 = vld [vmem:[#allocation6 + $0x40] sm:$0xff]  ;;  %306 = vmatpush.bf16.msra.mxu2 %v459_v20  ;;  %v458_v21 = vld [vmem:[#allocation6 + $0xb0] sm:$0xff]  ;;  %v457_v22 = vld [vmem:[#allocation6 + $0xa8] sm:$0xff] }
  0x17   :  { %222 = vmatpush.bf16.msra.mxu1 %v450_v5  ;;  %v456_v23 = vld [vmem:[#allocation6 + $0xa0] sm:$0xff]  ;;  %v455_v24 = vld [vmem:[#allocation6 + $0x98] sm:$0xff]  ;;  %v454_v25 = vld [vmem:[#allocation6 + $0x90] sm:$0xff] }
  0x18   :  { %v471_v26 = vld [vmem:[#allocation8] ss:$0 sm:$0xff]  ;;  %v453_v32 = vld [vmem:[#allocation6 + $0x88] sm:$0xff]  ;;  %v472_v34 = vld [vmem:[#allocation8 + $0x1] ss:$0 sm:$0xff] }
  0x19   :  { %138 = vmatpush.bf16.msra.mxu0 %v441_v6  ;;  %v66_v16 = vld [vmem:[#allocation2] sm:$0xff]  ;;  %v452_v33 = vld [vmem:[#allocation6 + $0x80] sm:$0xff] }
  0x1a   :  { %v67_v17 = vpack.c.bf16 %v66_v16, %v66_v16  ;;  %307 = vmatpush.bf16.msra.mxu2 %v458_v21  ;;  %v473_v40 = vld [vmem:[#allocation8 + $0x2] ss:$0 sm:$0xff] }
  0x1b   :  { %223 = vmatpush.bf16.msra.mxu1 %v449_v7 }
  0x1d   :  { %139 = vmatpush.bf16.msra.mxu0 %v440_v8 }
  0x1e   :  { %308 = vmatpush.bf16.msra.mxu2 %v457_v22 }
  0x1f   :  { %224 = vmatpush.bf16.msra.mxu1 %v448_v9 }
  0x21   :  { %140 = vmatpush.bf16.msra.mxu0 %v439_v10 }
  0x22   :  { %309 = vmatpush.bf16.msra.mxu2 %v456_v23 }
  0x23   :  { %225 = vmatpush.bf16.msra.mxu1 %v447_v11 }
  0x25   :  { %141 = vmatpush.bf16.msra.mxu0 %v438_v12 }
  0x26   :  { %310 = vmatpush.bf16.msra.mxu2 %v455_v24 }
  0x27   :  { %226 = vmatpush.bf16.msra.mxu1 %v446_v13 }
  0x29   :  { %142 = vmatpush.bf16.msra.mxu0 %v437_v14 }
  0x2a   :  { %311 = vmatpush.bf16.msra.mxu2 %v454_v25 }
  0x2b   :  { %227 = vmatpush.bf16.msra.mxu1 %v445_v18 }
  0x2d   :  { %143 = vmatpush.bf16.msra.mxu0 %v436_v15 }
  0x2e   :  { %312 = vmatpush.bf16.msra.mxu2 %v453_v32 }
  0x2f   :  { %228 = vmatpush.bf16.msra.mxu1 %v444_v19 }
  0x30   :  { %144 = vmatmul.bf16.vlgmr.msra.gmra.mxu0 %v67_v17 }
  0x32   :  { %313 = vmatpush.bf16.msra.mxu2 %v452_v33 }
  0xad   :  { %v145_v27 = vpop.f32.mrf.mxu0 }
  0xae   :  { %v146_v28 = vadd.f32 %v471_v26, %v145_v27 }
  0xb0   :  { %v149_v29 = vmax.f32 %v146_v28, 0.0 }
  0xb2   :  { %v150_v30 = vpack.c.bf16 %v149_v29, %v149_v29 }
  0xb4   :  { %229 = vmatmul.bf16.vlgmr.msra.gmra.mxu1 %v150_v30 }
  0xb5   :  { %v147_v31 = vpop.f32.mrf.mxu0 }
 0x131   :  { %v230_v35 = vpop.f32.mrf.mxu1 }
 0x132   :  { %v231_v36 = vadd.f32 %v472_v34, %v230_v35 }
 0x134   :  { %v234_v37 = vmax.f32 %v231_v36, 0.0 }
 0x136   :  { %v235_v38 = vpack.c.bf16 %v234_v37, %v234_v37 }
 0x138   :  { %314 = vmatmul.bf16.vlgmr.msra.gmra.mxu2 %v235_v38 }
 0x139   :  { %v232_v39 = vpop.f32.mrf.mxu1 }
 0x1bb   :  { %v315_v41 = vpop.f32.mrf.mxu2 }
 0x1bc   :  { %v316_v42 = vadd.f32 %v473_v40, %v315_v41 }
 0x1be   :  { %319 = vst [vmem:[#allocation9] sm:$0xff] %v316_v42 }
 0x1c3   :  { %v317_v43 = vpop.f32.mrf.mxu2 }
 0x1c4   :  { %323 = vsyncadd [#allocation5], 96  ;;  %s326_s5 = sshll.u32 %s628_s3, 4  ;;  %s586_s6 = smov [#allocation9]   ;;  %s327_s5 = int_to_ptr.hbm [resolvable:$true] %s326_s5 }
 0x1c5   :  { %s324_s7 = sshll.u32 %s586_s6, 4  ;;  %s325_s7 = int_to_ptr.vmem [resolvable:$true] %s324_s7 }
 0x1c6   :  { %332 = dma.vmem_to_hbm [thread:$0]  %s325_s7, 32, %s327_s5, [#allocation5], %s580_s24, %s580_s24, %s581_s25  }
 0x1c7   :  { %574 = dma.done.wait [#allocation5], 128  }
 0x1c8   :  { %575 = vsyncadd [#allocation5], 4294967168 }
 0x1c9   :  { %337 = vsyncpa [#allocation4], 1 }
 0x1ca   :  { %338 = vsyncpa [#allocation7], 1 }
 0x1cb   :  { %339 = vsyncpa [#allocation5], 1 }

</bundles_post_ra>
